<compile_context>
chip_gen: v5e
topology: v5e:2x2
jax: 0.10.0
libtpu: 0.0.40
codegen_flags: <defaults>
</compile_context>

<pallas_src>
import functools

import jax
import jax.numpy as jnp
from jax.experimental import pallas as pl
from jax.experimental.pallas import tpu as pltpu

LANE = 128      # vreg lane width; hidden/output feature dims are zero-padded to this
SUBLANE = 8     # f32 sublane granularity (batch tiles are multiples of this)
BT_CAP = 512    # max rows per grid step: amortizes step overhead; batches > 512 rows
                # split into >=2 tiles so v7x's two TensorCores both get work


def _round_up(n, m):
    return ((n + m - 1) // m) * m


# ----------------------------------------------------------------------------
# Kernel: one batch tile; all parameters VMEM-resident across grid steps.
# ----------------------------------------------------------------------------
def _mlp_kernel(x_ref, w_ref, b_ref, o_ref, *, in_size, out_size):
    # x_ref: [BT, in_size]      unpadded input tile (Mosaic handles lane padding)
    # w_ref: [LANE, 3*LANE]     packed [w1 | w2 | w3], each zero-padded to 128x128
    # b_ref: [1, 3*LANE]        packed [b1 | b2 | b3], zero-padded
    # o_ref: [BT, out_size]     real output tile (no padded lanes stored)
    x = x_ref[...]

    w1 = w_ref[:in_size, 0 * LANE:1 * LANE]   # static ref slice (tile-aligned, free)
    w2 = w_ref[:, 1 * LANE:2 * LANE]
    w3 = w_ref[:, 2 * LANE:3 * LANE]
    b1 = b_ref[:, 0 * LANE:1 * LANE]
    b2 = b_ref[:, 1 * LANE:2 * LANE]
    b3 = b_ref[:, 2 * LANE:3 * LANE]

    prec = jax.lax.Precision.HIGHEST  # match PyTorch float32 Linear numerics
    h1 = jnp.maximum(
        jnp.dot(x, w1, preferred_element_type=jnp.float32, precision=prec) + b1, 0.0)
    h2 = jnp.maximum(
        jnp.dot(h1, w2, preferred_element_type=jnp.float32, precision=prec) + b2, 0.0)
    out = jnp.dot(h2, w3, preferred_element_type=jnp.float32, precision=prec) + b3
    o_ref[...] = out[:, :out_size].astype(o_ref.dtype)


# ----------------------------------------------------------------------------
# Parameter packing (done once, outside the hot path).
# ----------------------------------------------------------------------------
def pack_params(params):
    """Zero-pad each layer to 128x128 / 1x128 and concatenate into two slabs.

    If a large-batch, MXU-bound regime ever matters (v6e/v5e), pack the weight
    slab (and cast x) to bfloat16 here while keeping preferred_element_type=f32
    on the dots; numerics shift slightly vs float32.
    """
    def pad_w(w):  # [in, out] -> [LANE, LANE]
        return jnp.zeros((LANE, LANE), jnp.float32).at[: w.shape[0], : w.shape[1]].set(w)

    def pad_b(b):  # [1, out] -> [1, LANE]
        return jnp.zeros((1, LANE), jnp.float32).at[:, : b.shape[1]].set(b)

    w_slab = jnp.concatenate(
        [pad_w(params["w1"]), pad_w(params["w2"]), pad_w(params["w3"])], axis=1)
    b_slab = jnp.concatenate(
        [pad_b(params["b1"]), pad_b(params["b2"]), pad_b(params["b3"])], axis=1)
    return w_slab, b_slab   # [LANE, 3*LANE], [1, 3*LANE]


# ----------------------------------------------------------------------------
# Forward wrapper.
# ----------------------------------------------------------------------------
def linear_qnet_forward(x, packed_params, output_size):
    """x: [B, input_size] float32. packed_params: (w_slab, b_slab) from pack_params."""
    w_slab, b_slab = packed_params
    B, in_size = x.shape

    # Batch tiling: one grid step up to BT_CAP rows; larger batches split into
    # the fewest tiles that respect the cap (>=2 tiles -> both v7x TCs used).
    n_tiles = max(1, pl.cdiv(_round_up(B, SUBLANE), BT_CAP))
    BT = _round_up(pl.cdiv(B, n_tiles), SUBLANE)
    Bp = n_tiles * BT

    # Only pad the batch when B does not already fit the tiling (no wrapper pad
    # op in the common aligned case, e.g. B=8 inference).
    x_in = x if Bp == B else jnp.pad(x, ((0, Bp - B), (0, 0)))

    flops = 2 * Bp * LANE * LANE * 3
    bytes_accessed = 4 * (Bp * in_size + w_slab.size + b_slab.size + Bp * output_size)

    out = pl.pallas_call(
        functools.partial(_mlp_kernel, in_size=in_size, out_size=output_size),
        out_shape=jax.ShapeDtypeStruct((Bp, output_size), jnp.float32),
        grid=(n_tiles,),
        in_specs=[
            pl.BlockSpec((BT, in_size), lambda i: (i, 0)),        # x tile (unpadded lanes)
            pl.BlockSpec((LANE, 3 * LANE), lambda i: (0, 0)),     # weight slab (resident)
            pl.BlockSpec((1, 3 * LANE), lambda i: (0, 0)),        # bias slab (resident)
        ],
        out_specs=pl.BlockSpec((BT, output_size), lambda i: (i, 0)),
        compiler_params=pltpu.CompilerParams(
            dimension_semantics=("parallel",)),
        cost_estimate=pl.CostEstimate(
            flops=flops, transcendentals=0, bytes_accessed=bytes_accessed),
    )(x_in, w_slab, b_slab)

    return out if Bp == B else out[:B]


# ----------------------------------------------------------------------------
# Init mimicking PyTorch nn.Linear default (uniform +/- 1/sqrt(fan_in)).
# Weights stored as [in, out] (transposed vs PyTorch's [out, in]) so kernel does x @ W + b.
# Any torch checkpoint import must transpose W before pack_params.
# ----------------------------------------------------------------------------
def init_params(key, input_size, hidden1_size, hidden2_size, output_size):
    def linear_init(k, fan_in, fan_out):
        kw, kb = jax.random.split(k)
        bound = 1.0 / jnp.sqrt(jnp.float32(fan_in))
        w = jax.random.uniform(kw, (fan_in, fan_out), jnp.float32, -bound, bound)
        b = jax.random.uniform(kb, (1, fan_out), jnp.float32, -bound, bound)
        return w, b

    k1, k2, k3 = jax.random.split(key, 3)
    w1, b1 = linear_init(k1, input_size, hidden1_size)
    w2, b2 = linear_init(k2, hidden1_size, hidden2_size)
    w3, b3 = linear_init(k3, hidden2_size, output_size)
    return {"w1": w1, "b1": b1, "w2": w2, "b2": b2, "w3": w3, "b3": b3}


def _reference_forward(x, p):
    prec = jax.lax.Precision.HIGHEST
    h1 = jnp.maximum(jnp.dot(x, p["w1"], precision=prec) + p["b1"], 0.0)
    h2 = jnp.maximum(jnp.dot(h1, p["w2"], precision=prec) + p["b2"], 0.0)
    return jnp.dot(h2, p["w3"], precision=prec) + p["b3"]


if __name__ == "__main__":
    # Snake-game Q-net style sizes.
    input_size = 16
    hidden1_size = 32
    hidden2_size = 32
    output_size = 4

    key = jax.random.PRNGKey(0)
    kx, kp, kx2 = jax.random.split(key, 3)
    params = init_params(kp, input_size, hidden1_size, hidden2_size, output_size)
    packed = pack_params(params)   # done once; weights/biases become 2 dense slabs

    # Case 1: small inference batch (single grid step, no wrapper pad/slice).
    x_small = jax.random.normal(kx, (8, input_size), jnp.float32)
    out_small = jax.block_until_ready(linear_qnet_forward(x_small, packed, output_size))
    ref_small = _reference_forward(x_small, params)
    assert out_small.shape == (8, output_size)
    assert jnp.allclose(out_small, ref_small, atol=1e-5, rtol=1e-5), \
        "Pallas kernel mismatch vs reference (small batch)"

    # Case 2: training-sized batch (exercises multi-tile grid + batch padding path).
    x_train = jax.random.normal(kx2, (600, input_size), jnp.float32)
    out_train = jax.block_until_ready(linear_qnet_forward(x_train, packed, output_size))
    ref_train = _reference_forward(x_train, params)
    assert out_train.shape == (600, output_size)
    assert jnp.allclose(out_train, ref_train, atol=1e-5, rtol=1e-5), \
        "Pallas kernel mismatch vs reference (training batch)"

    print("KERNEL_OK")
</pallas_src>

<mosaic_0001>
module attributes {stable_mosaic.version = 11 : i64} {
  func.func @_mlp_kernel(%arg0: i32, %arg1: memref<8x16xf32, #tpu.memory_space<vmem>>, %arg2: memref<128x384xf32, #tpu.memory_space<vmem>>, %arg3: memref<1x384xf32, #tpu.memory_space<vmem>>, %arg4: memref<8x4xf32, #tpu.memory_space<vmem>>) attributes {dimension_semantics = [#tpu.dimension_semantics<parallel>], iteration_bounds = array<i64: 1>, scalar_prefetch = 0 : i64, scratch_operands = 0 : i64, tpu.core_type = #tpu.core_type<tc>, window_params = [{transform_indices = @transform_0, window_bounds = array<i64: 8, 16>}, {pipeline_mode = #tpu.pipeline_mode<synchronous>, transform_indices = @transform_1, window_bounds = array<i64: 128, 384>}, {pipeline_mode = #tpu.pipeline_mode<synchronous>, transform_indices = @transform_2, window_bounds = array<i64: 1, 384>}, {transform_indices = @transform_3, window_bounds = array<i64: 8, 4>}]} {
    %c0 = arith.constant 0 : index
    %c0_0 = arith.constant 0 : index
    %0 = vector.load %arg1[%c0, %c0_0] : memref<8x16xf32, #tpu.memory_space<vmem>>, vector<8x16xf32>
    %c0_1 = arith.constant 0 : index
    %c0_2 = arith.constant 0 : index
    %1 = vector.load %arg2[%c0_1, %c0_2] : memref<128x384xf32, #tpu.memory_space<vmem>>, vector<16x128xf32>
    %c0_3 = arith.constant 0 : index
    %c128 = arith.constant 128 : index
    %2 = vector.load %arg2[%c0_3, %c128] : memref<128x384xf32, #tpu.memory_space<vmem>>, vector<128x128xf32>
    %c0_4 = arith.constant 0 : index
    %c256 = arith.constant 256 : index
    %3 = vector.load %arg2[%c0_4, %c256] : memref<128x384xf32, #tpu.memory_space<vmem>>, vector<128x128xf32>
    %c0_5 = arith.constant 0 : index
    %c0_6 = arith.constant 0 : index
    %4 = vector.load %arg3[%c0_5, %c0_6] : memref<1x384xf32, #tpu.memory_space<vmem>>, vector<1x128xf32>
    %c0_7 = arith.constant 0 : index
    %c128_8 = arith.constant 128 : index
    %5 = vector.load %arg3[%c0_7, %c128_8] : memref<1x384xf32, #tpu.memory_space<vmem>>, vector<1x128xf32>
    %c0_9 = arith.constant 0 : index
    %c256_10 = arith.constant 256 : index
    %6 = vector.load %arg3[%c0_9, %c256_10] : memref<1x384xf32, #tpu.memory_space<vmem>>, vector<1x128xf32>
    %cst = arith.constant dense<0.000000e+00> : vector<8x128xf32>
    %7 = tpu.matmul %0, %1, %cst {dimension_numbers = #tpu.dot_dimension_numbers<[1], [0], [0], [1], [0, 0, 1, 1], [], []>, precision = #tpu.contract_precision<fp32>} : vector<8x16xf32>, vector<16x128xf32>, vector<8x128xf32> -> vector<8x128xf32>
    %8 = vector.broadcast %4 : vector<1x128xf32> to vector<8x128xf32>
    %9 = arith.addf %7, %8 : vector<8x128xf32>
    %cst_11 = arith.constant 0.000000e+00 : f32
    %10 = vector.broadcast %cst_11 : f32 to vector<8x128xf32>
    %11 = arith.maximumf %9, %10 : vector<8x128xf32>
    %cst_12 = arith.constant dense<0.000000e+00> : vector<8x128xf32>
    %12 = tpu.matmul %11, %2, %cst_12 {dimension_numbers = #tpu.dot_dimension_numbers<[1], [0], [0], [1], [0, 0, 1, 1], [], []>, precision = #tpu.contract_precision<fp32>} : vector<8x128xf32>, vector<128x128xf32>, vector<8x128xf32> -> vector<8x128xf32>
    %13 = vector.broadcast %5 : vector<1x128xf32> to vector<8x128xf32>
    %14 = arith.addf %12, %13 : vector<8x128xf32>
    %cst_13 = arith.constant 0.000000e+00 : f32
    %15 = vector.broadcast %cst_13 : f32 to vector<8x128xf32>
    %16 = arith.maximumf %14, %15 : vector<8x128xf32>
    %cst_14 = arith.constant dense<0.000000e+00> : vector<8x128xf32>
    %17 = tpu.matmul %16, %3, %cst_14 {dimension_numbers = #tpu.dot_dimension_numbers<[1], [0], [0], [1], [0, 0, 1, 1], [], []>, precision = #tpu.contract_precision<fp32>} : vector<8x128xf32>, vector<128x128xf32>, vector<8x128xf32> -> vector<8x128xf32>
    %18 = vector.broadcast %6 : vector<1x128xf32> to vector<8x128xf32>
    %19 = arith.addf %17, %18 : vector<8x128xf32>
    %20 = vector.extract_strided_slice %19 {offsets = [0, 0], sizes = [8, 4], strides = [1, 1]} : vector<8x128xf32> to vector<8x4xf32>
    %c0_15 = arith.constant 0 : index
    %c0_16 = arith.constant 0 : index
    %21 = vector.load %arg4[%c0_15, %c0_16] : memref<8x4xf32, #tpu.memory_space<vmem>>, vector<8x4xf32>
    tpu.vector_store %arg4[%c0_15, %c0_16], %20 {strides = array<i32>} : memref<8x4xf32, #tpu.memory_space<vmem>>, vector<8x4xf32>,
    return
  }
  func.func @transform_0(%arg0: i32) -> (i32, i32) {
    %c0_i32 = arith.constant 0 : i32
    %c0_i32_0 = arith.constant 0 : i32
    return %arg0, %c0_i32 : i32, i32
  }
  func.func @transform_1(%arg0: i32) -> (i32, i32) {
    %c0_i32 = arith.constant 0 : i32
    %c0_i32_0 = arith.constant 0 : i32
    %c0_i32_1 = arith.constant 0 : i32
    return %c0_i32, %c0_i32_0 : i32, i32
  }
  func.func @transform_2(%arg0: i32) -> (i32, i32) {
    %c0_i32 = arith.constant 0 : i32
    %c0_i32_0 = arith.constant 0 : i32
    %c0_i32_1 = arith.constant 0 : i32
    return %c0_i32, %c0_i32_0 : i32, i32
  }
  func.func @transform_3(%arg0: i32) -> (i32, i32) {
    %c0_i32 = arith.constant 0 : i32
    %c0_i32_0 = arith.constant 0 : i32
    return %arg0, %c0_i32 : i32, i32
  }
}

</mosaic_0001>

<bundles_post_ra>
// kernel: tpu_custom_call.1
= control target key start
LH: loop header
LB: loop body
LE: loop exit
PB: predicated region body
PF: predicated region fallthrough
CT: control target
= control target key end

     0   :  { %8 = vsyncpa [#allocation3], 0  ;;  %s1533_s0 = inlined_call_operand.hbm [shape: f32[8,16], index: 0, kind: input, shape index: {}]   ;;  %s1534_s1 = inlined_call_operand.hbm [shape: f32[128,384], index: 1, kind: input, shape index: {}]   ;;  %s1535_s2 = inlined_call_operand.hbm [shape: f32[1,384], index: 2, kind: input, shape index: {}]   ;;  %s1536_s3 = inlined_call_operand.vmem [shape: f32[8,4], index: 3, kind: output, shape index: {}]  }
   0x1   :  { %9 = vsyncpa [#allocation5], 0  ;;  %s25_s14 = sshll.u32 %s1534_s1, 4  ;;  %s1043_s15 = smov [#allocation4]   ;;  %s26_s14 = int_to_ptr.hbm [resolvable:$true] %s25_s14 }
   0x2   :  { %s27_s16 = sshll.u32 %s1043_s15, 4  ;;  %s15_s19 = sshll.u32 %s1533_s0, 4  ;;  %s28_s16 = int_to_ptr.vmem [resolvable:$true] %s27_s16  ;;  %s16_s19 = int_to_ptr.hbm [resolvable:$true] %s15_s19 }
   0x3   :  { %s1044_s20 = smov 384   ;;  %s1045_s21 = smov 24  }
   0x4   :  { %33 = dma.hbm_to_vmem [thread:$0]  %s26_s14, 6144, %s28_s16, [#allocation5], %s1044_s20, %s1044_s20, %s1045_s21  }
   0x5   :  { %s1046_s22 = smov [#allocation2]   ;;  %s39_s26 = sshll.u32 %s1535_s2, 4  ;;  %s40_s26 = int_to_ptr.hbm [resolvable:$true] %s39_s26 }
   0x6   :  { %s17_s23 = sshll.u32 %s1046_s22, 4  ;;  %s1047_s1 = smov [#allocation6]   ;;  %s18_s23 = int_to_ptr.vmem [resolvable:$true] %s17_s23 }
   0x7   :  { %20 = dma.hbm_to_vmem [thread:$0]  %s16_s19, 128, %s18_s23, [#allocation3]  }
   0x8   :  { %s41_s27 = sshll.u32 %s1047_s1, 4  ;;  %s42_s27 = int_to_ptr.vmem [resolvable:$true] %s41_s27 }
   0x9   :  { %44 = dma.hbm_to_vmem [thread:$0]  %s40_s26, 48, %s42_s27, [#allocation5]  }
   0xa   :  { %1039 = dma.done.wait [#allocation3], 128  }
   0xb   :  { %1040 = vsyncadd [#allocation3], 4294967168 }
   0xc   :  { %1041 = dma.done.wait [#allocation5], 6192  }
   0xd   :  { %1042 = vsyncadd [#allocation5], 4294961104  ;;  %vm98_vm0 = vcmask 130048   ;;  %v59_v0 = vld [vmem:[#allocation4 + $0x18] sm:$0xff]  ;;  %v58_v1 = vld [vmem:[#allocation4] sm:$0xff]  ;;  %vm951_vm1 = vcmask 31744  }
   0xe   :  { %v57_v2 = vld [vmem:[#allocation2] sm:$0xff]  ;;  %v1077_v3 = vand.u32 4294901760, %v59_v0  ;;  %v1079_v4 = vand.u32 4294901760, %v58_v1  ;;  %v75_v6 = vld [vmem:[#allocation4 + $0x170] sm:$0xff]  ;;  %v73_v8 = vld [vmem:[#allocation4 + $0x140] sm:$0xff] }
   0xf   :  { %v100_v5 = vsel %vm98_vm0, %v57_v2, 0  ;;  %v74_v7 = vld [vmem:[#allocation4 + $0x158] sm:$0xff]  ;;  %v1083_v10 = vand.u32 4294901760, %v75_v6  ;;  %v1087_v12 = vand.u32 4294901760, %v73_v8  ;;  %v72_v13 = vld [vmem:[#allocation4 + $0x128] sm:$0xff]  ;;  %v71_v14 = vld [vmem:[#allocation4 + $0x110] sm:$0xff] }
  0x10   :  { %v1081_v9 = vand.u32 4294901760, %v100_v5  ;;  %v1085_v11 = vand.u32 4294901760, %v74_v7  ;;  %v144_v15 = vsub.f32 %v59_v0, %v1077_v3  ;;  %117 = vmatpush.msra.mxu0 %v1077_v3  ;;  %v150_v16 = vsub.f32 %v58_v1, %v1079_v4  ;;  %201 = vmatpush.msra.mxu3 %v1077_v3  ;;  %v70_v27 = vld [vmem:[#allocation4 + $0xf8] sm:$0xff]  ;;  %v69_v40 = vld [vmem:[#allocation4 + $0xe0] sm:$0xff]  ;;  %v68_v44 = vld [vmem:[#allocation4 + $0xc8] sm:$0xff] }
  0x11   :  { %v1093_v17 = vand.u32 4294901760, %v72_v13  ;;  %v1095_v18 = vand.u32 4294901760, %v71_v14  ;;  %v1099_v20 = vsub.f32 %v75_v6, %v1083_v10  ;;  %v1105_v22 = vsub.f32 %v73_v8, %v1087_v12  ;;  %v67_v45 = vld [vmem:[#allocation4 + $0xb0] sm:$0xff]  ;;  %v66_v46 = vld [vmem:[#allocation4 + $0x98] sm:$0xff]  ;;  %v65_v51 = vld [vmem:[#allocation4 + $0x80] sm:$0xff] }
  0x12   :  { %v121_v19 = vsub.f32 %v100_v5, %v1081_v9  ;;  %v1102_v21 = vsub.f32 %v74_v7, %v1085_v11  ;;  %176 = vmatpush.msra.mxu2 %v144_v15  ;;  %119 = vmatpush.msra.mxu0 %v1079_v4  ;;  %v145_v23 = vand.u32 4294901760, %v144_v15  ;;  %v151_v24 = vand.u32 4294901760, %v150_v16  ;;  %v64_v52 = vld [vmem:[#allocation4 + $0x68] sm:$0xff]  ;;  %v63_v0 = vld [vmem:[#allocation4 + $0x50] sm:$0xff] }
  0x13   :  { %v1109_v25 = vsub.f32 %v72_v13, %v1093_v17  ;;  %v1112_v26 = vsub.f32 %v71_v14, %v1095_v18  ;;  %203 = vmatpush.msra.mxu3 %v1079_v4  ;;  %v308_v29 = vand.u32 4294901760, %v1099_v20  ;;  %v320_v31 = vand.u32 4294901760, %v1105_v22 }
  0x14   :  { %v122_v28 = vand.u32 4294901760, %v121_v19  ;;  %v314_v30 = vand.u32 4294901760, %v1102_v21  ;;  %179 = vmatpush.msra.mxu2 %v150_v16  ;;  %v146_v32 = vsub.f32 %v144_v15, %v145_v23  ;;  %228 = vmatpush.msrb.mxu0 %v145_v23  ;;  %v152_v33 = vsub.f32 %v150_v16, %v151_v24 }
  0x15   :  { %v326_v34 = vand.u32 4294901760, %v1109_v25  ;;  %v332_v35 = vand.u32 4294901760, %v1112_v26  ;;  %182 = vmatmul.f32.vlgmr.msra.gmra.mxu2 %v121_v19  ;;  %v309_v37 = vsub.f32 %v1099_v20, %v308_v29  ;;  %v1126_v39 = vand.u32 4294901760, %v70_v27 }
  0x16   :  { %v123_v36 = vsub.f32 %v121_v19, %v122_v28  ;;  %207 = vmatmul.f32.vlgmr.msra.gmra.mxu3 %v122_v28  ;;  %v315_v38 = vsub.f32 %v1102_v21, %v314_v30  ;;  %v147_v41 = vand.u32 4294901760, %v146_v32  ;;  %v153_v42 = vand.u32 4294901760, %v152_v33  ;;  %232 = vmatpush.msrb.mxu0 %v151_v24 }
  0x17   :  { %v321_v43 = vsub.f32 %v1105_v22, %v320_v31  ;;  %266 = vmatpush.msrb.mxu2 %v1083_v10  ;;  %v310_v48 = vand.u32 4294901760, %v309_v37  ;;  %v327_v50 = vsub.f32 %v1109_v25, %v326_v34  ;;  %v333_v53 = vsub.f32 %v1112_v26, %v332_v35 }
  0x18   :  { %v124_v47 = vand.u32 4294901760, %v123_v36  ;;  %v316_v49 = vand.u32 4294901760, %v315_v38  ;;  %148 = vmatpush.msra.mxu1 %v147_v41  ;;  %v1140_v54 = vsub.f32 %v70_v27, %v1126_v39  ;;  %v1142_v55 = vand.u32 4294901760, %v69_v40  ;;  %v60_v36 = vld [vmem:[#allocation4 + $0x8] sm:$0xff] }
  0x19   :  { %268 = vmatpush.msrb.mxu2 %v1085_v11  ;;  %311 = vmatpush.msrb.mxu3 %v310_v48  ;;  %v322_v56 = vand.u32 4294901760, %v321_v43  ;;  %v1144_v57 = vand.u32 4294901760, %v68_v44  ;;  %v1146_v58 = vand.u32 4294901760, %v67_v45  ;;  %v1148_v59 = vand.u32 4294901760, %v66_v46 }
  0x1a   :  { %125 = vmatmul.f32.vlgmr.msra.gmra.mxu0 %v124_v47  ;;  %154 = vmatpush.msra.mxu1 %v153_v42  ;;  %v338_v60 = vand.u32 4294901760, %v1140_v54  ;;  %v1153_v61 = vsub.f32 %v69_v40, %v1142_v55  ;;  %v1155_v62 = vand.u32 4294901760, %v65_v51  ;;  %v1157_v63 = vand.u32 4294901760, %v64_v52 }
  0x1b   :  { %270 = vmatpush.msrb.mxu2 %v1087_v12  ;;  %156 = vmatmul.f32.vlgmr.msra.gmra.mxu1 %v1081_v9  ;;  %v328_v1 = vand.u32 4294901760, %v327_v50  ;;  %v1161_v2 = vsub.f32 %v68_v44, %v1144_v57  ;;  %v1164_v5 = vsub.f32 %v67_v45, %v1146_v58  ;;  %v1167_v6 = vsub.f32 %v66_v46, %v1148_v59 }
  0x1c   :  { %317 = vmatpush.msrb.mxu3 %v316_v49  ;;  %253 = vmatpush.msrb.mxu1 %v1077_v3  ;;  %v334_v7 = vand.u32 4294901760, %v333_v53  ;;  %v339_v8 = vsub.f32 %v1140_v54, %v338_v60  ;;  %v344_v13 = vand.u32 4294901760, %v1153_v61  ;;  %v1178_v16 = vsub.f32 %v65_v51, %v1155_v62  ;;  %v62_v3 = vld [vmem:[#allocation4 + $0x38] sm:$0xff] }
  0x1d   :  { %272 = vmatpush.msrb.mxu2 %v1093_v17  ;;  %v350_v14 = vand.u32 4294901760, %v1161_v2  ;;  %v356_v15 = vand.u32 4294901760, %v1164_v5  ;;  %v1180_v19 = vand.u32 4294901760, %v63_v0  ;;  %409 = vmatpush.msra.mxu0 %v1099_v20  ;;  %v1189_v24 = vsub.f32 %v64_v52, %v1157_v63  ;;  %v89_v20 = vld [vmem:[#allocation4 + $0x148] sm:$0xff] }
  0x1e   :  { %323 = vmatpush.msrb.mxu3 %v322_v56  ;;  %255 = vmatpush.msrb.mxu1 %v1079_v4  ;;  %v345_v23 = vsub.f32 %v1153_v61, %v344_v13  ;;  %v340_v27 = vand.u32 4294901760, %v339_v8  ;;  %v362_v32 = vand.u32 4294901760, %v1167_v6  ;;  %v61_v4 = vld [vmem:[#allocation4 + $0x20] sm:$0xff]  ;;  %v1197_v33 = vand.u32 4294901760, %v62_v3 }
  0x1f   :  { %274 = vmatpush.msrb.mxu2 %v1095_v18  ;;  %v351_v28 = vsub.f32 %v1161_v2, %v350_v14  ;;  %412 = vmatpush.msra.mxu0 %v1102_v21  ;;  %v357_v38 = vsub.f32 %v1164_v5, %v356_v15  ;;  %v368_v40 = vand.u32 4294901760, %v1178_v16  ;;  %v1206_v41 = vsub.f32 %v63_v0, %v1180_v19 }
  0x20   :  { %329 = vmatpush.msrb.mxu3 %v328_v1  ;;  %462 = vmatpush.msra.mxu1 %v1083_v10  ;;  %v346_v37 = vand.u32 4294901760, %v345_v23  ;;  %v374_v42 = vand.u32 4294901760, %v1189_v24  ;;  %v1210_v43 = vand.u32 4294901760, %v61_v4  ;;  %v363_v45 = vsub.f32 %v1167_v6, %v362_v32 }
  0x21   :  { %276 = vmatpush.msrb.mxu2 %v1126_v39  ;;  %415 = vmatpush.msra.mxu0 %v1105_v22  ;;  %v352_v44 = vand.u32 4294901760, %v351_v28  ;;  %v1218_v46 = vsub.f32 %v62_v3, %v1197_v33  ;;  %v1220_v47 = vand.u32 4294901760, %v60_v36  ;;  %v358_v48 = vand.u32 4294901760, %v357_v38 }
  0x22   :  { %234 = vmatmul.f32.vlgmr.msrb.gmra.mxu0 %v1081_v9  ;;  %335 = vmatpush.msrb.mxu3 %v334_v7  ;;  %v380_v49 = vand.u32 4294901760, %v1206_v41  ;;  %v1229_v50 = vsub.f32 %v61_v4, %v1210_v43  ;;  %v364_v51 = vand.u32 4294901760, %v363_v45  ;;  %v375_v52 = vsub.f32 %v1189_v24, %v374_v42 }
  0x23   :  { %278 = vmatpush.msrb.mxu2 %v1142_v55  ;;  %257 = vmatmul.f32.vlgmr.msrb.gmra.mxu1 %v1081_v9  ;;  %v369_v9 = vsub.f32 %v1178_v16, %v368_v40  ;;  %v386_v53 = vand.u32 4294901760, %v1218_v46  ;;  %v1239_v56 = vsub.f32 %v60_v36, %v1220_v47 }
  0x24   :  { %341 = vmatpush.msrb.mxu3 %v340_v27  ;;  %464 = vmatpush.msra.mxu1 %v1085_v11  ;;  %v381_v1 = vsub.f32 %v1206_v41, %v380_v49  ;;  %v392_v7 = vand.u32 4294901760, %v1229_v50  ;;  %v376_v8 = vand.u32 4294901760, %v375_v52 }
  0x25   :  { %280 = vmatpush.msrb.mxu2 %v1144_v57  ;;  %418 = vmatpush.msra.mxu0 %v1109_v25  ;;  %v370_v0 = vand.u32 4294901760, %v369_v9  ;;  %v387_v3 = vsub.f32 %v1218_v46, %v386_v53  ;;  %v398_v23 = vand.u32 4294901760, %v1239_v56 }
  0x26   :  { %347 = vmatpush.msrb.mxu3 %v346_v37  ;;  %466 = vmatpush.msra.mxu1 %v1087_v12  ;;  %v382_v27 = vand.u32 4294901760, %v381_v1  ;;  %v393_v28 = vsub.f32 %v1229_v50, %v392_v7 }
  0x27   :  { %282 = vmatpush.msrb.mxu2 %v1146_v58  ;;  %421 = vmatpush.msra.mxu0 %v1112_v26  ;;  %v388_v4 = vand.u32 4294901760, %v387_v3  ;;  %v399_v36 = vsub.f32 %v1239_v56, %v398_v23 }
  0x28   :  { %353 = vmatpush.msrb.mxu3 %v352_v44  ;;  %468 = vmatpush.msra.mxu1 %v1093_v17  ;;  %v394_v37 = vand.u32 4294901760, %v393_v28 }
  0x29   :  { %284 = vmatpush.msrb.mxu2 %v1148_v59  ;;  %424 = vmatpush.msra.mxu0 %v1140_v54  ;;  %v400_v38 = vand.u32 4294901760, %v399_v36  ;;  %v79_v36 = vld [vmem:[#allocation4 + $0x58] sm:$0xff] }
  0x2a   :  { %359 = vmatpush.msrb.mxu3 %v358_v48  ;;  %470 = vmatpush.msra.mxu1 %v1095_v18  ;;  %v82_v48 = vld [vmem:[#allocation4 + $0xa0] sm:$0xff] }
  0x2b   :  { %286 = vmatpush.msrb.mxu2 %v1155_v62  ;;  %427 = vmatpush.msra.mxu0 %v1153_v61  ;;  %v1401_v3 = vand.u32 4294901760, %v82_v48 }
  0x2c   :  { %365 = vmatpush.msrb.mxu3 %v364_v51  ;;  %472 = vmatpush.msra.mxu1 %v1126_v39  ;;  %v81_v51 = vld [vmem:[#allocation4 + $0x88] sm:$0xff] }
  0x2d   :  { %288 = vmatpush.msrb.mxu2 %v1157_v63  ;;  %430 = vmatpush.msra.mxu0 %v1161_v2 }
  0x2e   :  { %371 = vmatpush.msrb.mxu3 %v370_v0  ;;  %474 = vmatpush.msra.mxu1 %v1142_v55  ;;  %v80_v0 = vld [vmem:[#allocation4 + $0x70] sm:$0xff] }
  0x2f   :  { %290 = vmatpush.msrb.mxu2 %v1180_v19  ;;  %433 = vmatpush.msra.mxu0 %v1164_v5 }
  0x30   :  { %377 = vmatpush.msrb.mxu3 %v376_v8  ;;  %476 = vmatpush.msra.mxu1 %v1144_v57 }
  0x31   :  { %292 = vmatpush.msrb.mxu2 %v1197_v33  ;;  %436 = vmatpush.msra.mxu0 %v1167_v6 }
  0x32   :  { %383 = vmatpush.msrb.mxu3 %v382_v27  ;;  %478 = vmatpush.msra.mxu1 %v1146_v58 }
  0x33   :  { %294 = vmatpush.msrb.mxu2 %v1210_v43  ;;  %439 = vmatpush.msra.mxu0 %v1178_v16 }
  0x34   :  { %389 = vmatpush.msrb.mxu3 %v388_v4  ;;  %480 = vmatpush.msra.mxu1 %v1148_v59  ;;  %v1406_v4 = vand.u32 4294901760, %v81_v51 }
  0x35   :  { %296 = vmatpush.msrb.mxu2 %v1220_v47  ;;  %442 = vmatpush.msra.mxu0 %v1189_v24 }
  0x36   :  { %395 = vmatpush.msrb.mxu3 %v394_v37  ;;  %482 = vmatpush.msra.mxu1 %v1155_v62 }
  0x37   :  { %503 = vmatpush.msra.mxu2 %v308_v29  ;;  %445 = vmatpush.msra.mxu0 %v1206_v41  ;;  %v1339_v29 = vand.u32 4294901760, %v89_v20 }
  0x38   :  { %401 = vmatpush.msrb.mxu3 %v400_v38  ;;  %484 = vmatpush.msra.mxu1 %v1157_v63 }
  0x39   :  { %507 = vmatpush.msra.mxu2 %v314_v30  ;;  %448 = vmatpush.msra.mxu0 %v1218_v46  ;;  %v88_v30 = vld [vmem:[#allocation4 + $0x130] sm:$0xff]  ;;  %v1354_v61 = vsub.f32 %v89_v20, %v1339_v29 }
  0x3a   :  { %570 = vmatpush.msra.mxu3 %v1083_v10  ;;  %486 = vmatpush.msra.mxu1 %v1180_v19  ;;  %v964_v10 = vld [vmem:[#allocation6] ss:$0 sm:$0xff]  ;;  %v84_v46 = vld [vmem:[#allocation4 + $0xd0] sm:$0xff] }
  0x3b   :  { %511 = vmatpush.msra.mxu2 %v320_v31  ;;  %451 = vmatpush.msra.mxu0 %v1229_v50  ;;  %v87_v31 = vld [vmem:[#allocation4 + $0x118] sm:$0xff] }
  0x3c   :  { %572 = vmatpush.msra.mxu3 %v1085_v11  ;;  %488 = vmatpush.msra.mxu1 %v1197_v33  ;;  %v1343_v54 = vand.u32 4294901760, %v87_v31 }
  0x3d   :  { %515 = vmatpush.msra.mxu2 %v326_v34  ;;  %454 = vmatpush.msra.mxu0 %v1239_v56  ;;  %v86_v34 = vld [vmem:[#allocation4 + $0x100] sm:$0xff] }
  0x3e   :  { %574 = vmatpush.msra.mxu3 %v1087_v12  ;;  %490 = vmatpush.msra.mxu1 %v1210_v43  ;;  %v1363_v5 = vsub.f32 %v87_v31, %v1343_v54 }
  0x3f   :  { %519 = vmatpush.msra.mxu2 %v332_v35 }
  0x40   :  { %576 = vmatpush.msra.mxu3 %v1093_v17  ;;  %492 = vmatpush.msra.mxu1 %v1220_v47  ;;  %v91_v17 = vld [vmem:[#allocation4 + $0x178] sm:$0xff]  ;;  %v677_v24 = vand.u32 4294901760, %v1363_v5 }
  0x41   :  { %523 = vmatpush.msra.mxu2 %v338_v60  ;;  %v1335_v25 = vand.u32 4294901760, %v91_v17 }
  0x42   :  { %578 = vmatpush.msra.mxu3 %v1095_v18  ;;  %v90_v18 = vld [vmem:[#allocation4 + $0x160] sm:$0xff] }
  0x43   :  { %527 = vmatpush.msra.mxu2 %v344_v13  ;;  %v1337_v26 = vand.u32 4294901760, %v90_v18  ;;  %611 = vmatpush.msrb.mxu0 %v1335_v25 }
  0x44   :  { %580 = vmatpush.msra.mxu3 %v1126_v39  ;;  %v1341_v39 = vand.u32 4294901760, %v88_v30 }
  0x45   :  { %531 = vmatpush.msra.mxu2 %v350_v14  ;;  %v1351_v60 = vsub.f32 %v90_v18, %v1337_v26  ;;  %613 = vmatpush.msrb.mxu0 %v1337_v26 }
  0x46   :  { %582 = vmatpush.msra.mxu3 %v1142_v55  ;;  %v1345_v55 = vand.u32 4294901760, %v86_v34  ;;  %v1360_v2 = vsub.f32 %v88_v30, %v1341_v39  ;;  %v1429_v30 = vand.u32 4294901760, %v79_v36 }
  0x47   :  { %535 = vmatpush.msra.mxu2 %v356_v15  ;;  %v659_v14 = vand.u32 4294901760, %v1351_v60  ;;  %v665_v15 = vand.u32 4294901760, %v1354_v61  ;;  %615 = vmatpush.msrb.mxu0 %v1339_v29 }
  0x48   :  { %584 = vmatpush.msra.mxu3 %v1144_v57  ;;  %v85_v57 = vld [vmem:[#allocation4 + $0xe8] sm:$0xff]  ;;  %v1366_v6 = vsub.f32 %v86_v34, %v1345_v55 }
  0x49   :  { %539 = vmatpush.msra.mxu2 %v362_v32  ;;  %v660_v41 = vsub.f32 %v1351_v60, %v659_v14  ;;  %617 = vmatpush.msrb.mxu0 %v1341_v39 }
  0x4a   :  { %586 = vmatpush.msra.mxu3 %v1146_v58  ;;  %v683_v45 = vand.u32 4294901760, %v1366_v6 }
  0x4b   :  { %543 = vmatpush.msra.mxu2 %v368_v40  ;;  %v661_v50 = vand.u32 4294901760, %v660_v41  ;;  %619 = vmatpush.msrb.mxu0 %v1343_v54  ;;  %v1446_v41 = vsub.f32 %v79_v36, %v1429_v30 }
  0x4c   :  { %588 = vmatpush.msra.mxu3 %v1148_v59  ;;  %v1348_v59 = vsub.f32 %v91_v17, %v1335_v25  ;;  %v684_v28 = vsub.f32 %v1366_v6, %v683_v45 }
  0x4d   :  { %547 = vmatpush.msra.mxu2 %v374_v42  ;;  %v666_v42 = vsub.f32 %v1354_v61, %v665_v15  ;;  %621 = vmatpush.msrb.mxu0 %v1345_v55 }
  0x4e   :  { %590 = vmatpush.msra.mxu3 %v1155_v62  ;;  %v1357_v62 = vand.u32 4294901760, %v85_v57  ;;  %v653_v13 = vand.u32 4294901760, %v1348_v59  ;;  %v685_v34 = vand.u32 4294901760, %v684_v28  ;;  %v77_v28 = vld [vmem:[#allocation4 + $0x28] sm:$0xff] }
  0x4f   :  { %551 = vmatpush.msra.mxu2 %v380_v49  ;;  %v667_v1 = vand.u32 4294901760, %v666_v42 }
  0x50   :  { %592 = vmatpush.msra.mxu3 %v1157_v63  ;;  %v1375_v32 = vsub.f32 %v85_v57, %v1357_v62  ;;  %v654_v40 = vsub.f32 %v1348_v59, %v653_v13  ;;  %623 = vmatpush.msrb.mxu0 %v1357_v62 }
  0x51   :  { %555 = vmatpush.msra.mxu2 %v386_v53  ;;  %v678_v53 = vsub.f32 %v1363_v5, %v677_v24 }
  0x52   :  { %594 = vmatpush.msra.mxu3 %v1180_v19  ;;  %v671_v19 = vand.u32 4294901760, %v1360_v2  ;;  %v655_v49 = vand.u32 4294901760, %v654_v40  ;;  %v689_v56 = vand.u32 4294901760, %v1375_v32 }
  0x53   :  { %559 = vmatpush.msra.mxu2 %v392_v7  ;;  %v1396_v7 = vand.u32 4294901760, %v84_v46  ;;  %v679_v17 = vand.u32 4294901760, %v678_v53 }
  0x54   :  { %596 = vmatpush.msra.mxu3 %v1197_v33  ;;  %v672_v44 = vsub.f32 %v1360_v2, %v671_v19  ;;  %656 = vmatpush.msrb.mxu1 %v655_v49  ;;  %v690_v18 = vsub.f32 %v1375_v32, %v689_v56  ;;  %v725_v49 = vand.u32 4294901760, %v1446_v41 }
  0x55   :  { %563 = vmatpush.msra.mxu2 %v398_v23  ;;  %v1409_v37 = vsub.f32 %v84_v46, %v1396_v7  ;;  %625 = vmatpush.msrb.mxu0 %v1396_v7 }
  0x56   :  { %598 = vmatpush.msra.mxu3 %v1210_v43  ;;  %v673_v27 = vand.u32 4294901760, %v672_v44  ;;  %662 = vmatpush.msrb.mxu1 %v661_v50  ;;  %v726_v53 = vsub.f32 %v1446_v41, %v725_v49 }
  0x57   :  { %v695_v20 = vand.u32 4294901760, %v1409_v37 }
  0x58   :  { %600 = vmatpush.msra.mxu3 %v1220_v47  ;;  %v83_v47 = vld [vmem:[#allocation4 + $0xb8] sm:$0xff]  ;;  %668 = vmatpush.msrb.mxu1 %v667_v1  ;;  %v727_v1 = vand.u32 4294901760, %v726_v53 }
  0x59   :  { %v1399_v8 = vand.u32 4294901760, %v83_v47 }
  0x5a   :  { %674 = vmatpush.msrb.mxu1 %v673_v27 }
  0x5b   :  { %v1412_v38 = vsub.f32 %v83_v47, %v1399_v8  ;;  %627 = vmatpush.msrb.mxu0 %v1399_v8 }
  0x5c   :  { %680 = vmatpush.msrb.mxu1 %v679_v17  ;;  %v76_v17 = vld [vmem:[#allocation4 + $0x10] sm:$0xff] }
  0x5d   :  { %629 = vmatpush.msrb.mxu0 %v1401_v3 }
  0x5e   :  { %686 = vmatpush.msrb.mxu1 %v685_v34  ;;  %v640_v34 = vand.u32 4294901760, %v76_v17 }
  0x5f   :  { %631 = vmatpush.msrb.mxu0 %v1406_v4 }
  0x97   :  { %v126_v11 = vpop.f32.mrf.mxu0 }
  0x98   :  { %v127_v12 = vadd.f32 %v964_v10, %v126_v11  ;;  %v157_v21 = vpop.f32.mrf.mxu1  ;;  %v183_v22 = vpop.f32.mrf.mxu2  ;;  %v1416_v10 = vsub.f32 %v82_v48, %v1401_v3  ;;  %v1418_v11 = vand.u32 4294901760, %v80_v0 }
  0x99   :  { %v208_v58 = vpop.f32.mrf.mxu3 }
  0x9a   :  { %v158_v35 = vadd.f32 %v157_v21, %v127_v12  ;;  %v701_v21 = vand.u32 4294901760, %v1412_v38  ;;  %v707_v57 = vand.u32 4294901760, %v1416_v10  ;;  %633 = vmatpush.msrb.mxu0 %v1418_v11 }
  0x9c   :  { %v184_v63 = vadd.f32 %v183_v22, %v158_v35  ;;  %v1427_v22 = vsub.f32 %v81_v51, %v1406_v4  ;;  %v696_v35 = vsub.f32 %v1409_v37, %v695_v20  ;;  %v708_v44 = vsub.f32 %v1416_v10, %v707_v57  ;;  %635 = vmatpush.msrb.mxu0 %v1429_v30 }
  0x9e   :  { %v209_v16 = vadd.f32 %v208_v58, %v184_v63  ;;  %v1437_v58 = vsub.f32 %v80_v0, %v1418_v11  ;;  %v713_v40 = vand.u32 4294901760, %v1427_v22  ;;  %v709_v50 = vand.u32 4294901760, %v708_v44 }
  0x9f   :  { %v235_v33 = vpop.f32.mrf.mxu0 }
  0xa0   :  { %v236_v43 = vadd.f32 %v235_v33, %v209_v16  ;;  %v258_v9 = vpop.f32.mrf.mxu1  ;;  %v691_v16 = vand.u32 4294901760, %v690_v18  ;;  %v702_v33 = vsub.f32 %v1412_v38, %v701_v21  ;;  %v719_v46 = vand.u32 4294901760, %v1437_v58 }
  0xa2   :  { %v259_v52 = vadd.f32 %v258_v9, %v236_v43  ;;  %v697_v43 = vand.u32 4294901760, %v696_v35  ;;  %692 = vmatpush.msrb.mxu1 %v691_v16  ;;  %v703_v48 = vand.u32 4294901760, %v702_v33  ;;  %v714_v9 = vsub.f32 %v1427_v22, %v713_v40 }
  0xa3   :  { %v720_v51 = vsub.f32 %v1437_v58, %v719_v46  ;;  %v742_v16 = vsub.f32 %v76_v17, %v640_v34 }
  0xa4   :  { %v261_v23 = vmax.f32 %v259_v52, 0.0  ;;  %698 = vmatpush.msrb.mxu1 %v697_v43  ;;  %v715_v52 = vand.u32 4294901760, %v714_v9 }
  0xa5   :  { %v721_v0 = vand.u32 4294901760, %v720_v51  ;;  %v743_v43 = vand.u32 4294901760, %v742_v16 }
  0xa6   :  { %v297_v12 = vand.u32 4294901760, %v261_v23  ;;  %704 = vmatpush.msrb.mxu1 %v703_v48 }
  0xa8   :  { %v298_v31 = vsub.f32 %v261_v23, %v297_v12  ;;  %403 = vmatmul.f32.vlgmr.msrb.gmra.mxu3 %v297_v12  ;;  %710 = vmatpush.msrb.mxu1 %v709_v50  ;;  %v78_v23 = vld [vmem:[#allocation4 + $0x40] sm:$0xff] }
  0xa9   :  { %807 = vmatpush.msrb.mxu3 %v1335_v25  ;;  %v636_v27 = vand.u32 4294901760, %v78_v23 }
  0xaa   :  { %457 = vmatmul.f32.vlgmr.msra.gmra.mxu0 %v298_v31  ;;  %v299_v63 = vand.u32 4294901760, %v298_v31  ;;  %716 = vmatpush.msrb.mxu1 %v715_v52 }
  0xab   :  { %809 = vmatpush.msrb.mxu3 %v1337_v26  ;;  %v730_v36 = vsub.f32 %v78_v23, %v636_v27  ;;  %637 = vmatpush.msrb.mxu0 %v636_v27 }
  0xac   :  { %496 = vmatmul.f32.vlgmr.msra.gmra.mxu1 %v299_v63  ;;  %v300_v42 = vsub.f32 %v298_v31, %v299_v63 }
  0xad   :  { %811 = vmatpush.msrb.mxu3 %v1339_v29  ;;  %722 = vmatpush.msrb.mxu1 %v721_v0  ;;  %v731_v18 = vand.u32 4294901760, %v730_v36 }
  0xae   :  { %v301_v47 = vand.u32 4294901760, %v300_v42 }
  0xaf   :  { %813 = vmatpush.msrb.mxu3 %v1341_v39  ;;  %728 = vmatpush.msrb.mxu1 %v727_v1  ;;  %v732_v35 = vsub.f32 %v730_v36, %v731_v18 }
  0xb0   :  { %302 = vmatmul.f32.vlgmr.msrb.gmra.mxu2 %v301_v47  ;;  %602 = vmatmul.f32.vlgmr.msra.gmra.mxu3 %v297_v12  ;;  %v744_v47 = vsub.f32 %v742_v16, %v743_v43 }
  0xb1   :  { %754 = vmatpush.msrb.mxu2 %v1348_v59  ;;  %815 = vmatpush.msrb.mxu3 %v1343_v54  ;;  %v733_v33 = vand.u32 4294901760, %v732_v35 }
  0xb2   :  { %v745_v48 = vand.u32 4294901760, %v744_v47 }
  0xb3   :  { %757 = vmatpush.msrb.mxu2 %v1351_v60  ;;  %817 = vmatpush.msrb.mxu3 %v1345_v55 }
  0xb4   :  { %734 = vmatpush.msrb.mxu1 %v733_v33 }
  0xb5   :  { %760 = vmatpush.msrb.mxu2 %v1354_v61  ;;  %819 = vmatpush.msrb.mxu3 %v1357_v62 }
  0xb7   :  { %763 = vmatpush.msrb.mxu2 %v1360_v2  ;;  %821 = vmatpush.msrb.mxu3 %v1396_v7 }
  0xb8   :  { %565 = vmatmul.f32.vlgmr.msra.gmra.mxu2 %v297_v12  ;;  %v638_v12 = vand.u32 4294901760, %v77_v28 }
  0xb9   :  { %766 = vmatpush.msrb.mxu2 %v1363_v5  ;;  %823 = vmatpush.msrb.mxu3 %v1399_v8 }
  0xba   :  { %v736_v31 = vsub.f32 %v77_v28, %v638_v12  ;;  %639 = vmatpush.msrb.mxu0 %v638_v12 }
  0xbb   :  { %769 = vmatpush.msrb.mxu2 %v1366_v6  ;;  %825 = vmatpush.msrb.mxu3 %v1401_v3 }
  0xbc   :  { %v737_v63 = vand.u32 4294901760, %v736_v31  ;;  %641 = vmatpush.msrb.mxu0 %v640_v34 }
  0xbd   :  { %772 = vmatpush.msrb.mxu2 %v1375_v32  ;;  %827 = vmatpush.msrb.mxu3 %v1406_v4 }
  0xbe   :  { %848 = vmatpush.msra.mxu0 %v653_v13  ;;  %v738_v42 = vsub.f32 %v736_v31, %v737_v63 }
  0xbf   :  { %775 = vmatpush.msrb.mxu2 %v1409_v37  ;;  %829 = vmatpush.msrb.mxu3 %v1418_v11 }
  0xc0   :  { %852 = vmatpush.msra.mxu0 %v659_v14  ;;  %v739_v44 = vand.u32 4294901760, %v738_v42 }
  0xc1   :  { %778 = vmatpush.msrb.mxu2 %v1412_v38  ;;  %831 = vmatpush.msrb.mxu3 %v1429_v30 }
  0xc2   :  { %856 = vmatpush.msra.mxu0 %v665_v15  ;;  %740 = vmatpush.msrb.mxu1 %v739_v44 }
  0xc3   :  { %781 = vmatpush.msrb.mxu2 %v1416_v10  ;;  %833 = vmatpush.msrb.mxu3 %v636_v27 }
  0xc4   :  { %860 = vmatpush.msra.mxu0 %v671_v19  ;;  %746 = vmatpush.msrb.mxu1 %v745_v48 }
  0xc5   :  { %784 = vmatpush.msrb.mxu2 %v1427_v22  ;;  %835 = vmatpush.msrb.mxu3 %v638_v12 }
  0xc6   :  { %915 = vmatpush.msra.mxu1 %v1335_v25  ;;  %864 = vmatpush.msra.mxu0 %v677_v24  ;;  %v965_v25 = vld [vmem:[#allocation6 + $0x1] ss:$0 sm:$0xff] }
  0xc7   :  { %787 = vmatpush.msrb.mxu2 %v1437_v58  ;;  %837 = vmatpush.msrb.mxu3 %v640_v34 }
  0xc8   :  { %917 = vmatpush.msra.mxu1 %v1337_v26  ;;  %868 = vmatpush.msra.mxu0 %v683_v45  ;;  %v966_v45 = vld [vmem:[#allocation6 + $0x2] ss:$0 sm:$0xff] }
  0xc9   :  { %790 = vmatpush.msrb.mxu2 %v1446_v41 }
  0xca   :  { %919 = vmatpush.msra.mxu1 %v1339_v29  ;;  %872 = vmatpush.msra.mxu0 %v689_v56 }
  0xcb   :  { %793 = vmatpush.msrb.mxu2 %v730_v36 }
  0xcc   :  { %921 = vmatpush.msra.mxu1 %v1341_v39  ;;  %876 = vmatpush.msra.mxu0 %v695_v20 }
  0xcd   :  { %796 = vmatpush.msrb.mxu2 %v736_v31 }
  0xce   :  { %923 = vmatpush.msra.mxu1 %v1343_v54  ;;  %880 = vmatpush.msra.mxu0 %v701_v21 }
  0xcf   :  { %799 = vmatpush.msrb.mxu2 %v742_v16 }
  0xd0   :  { %925 = vmatpush.msra.mxu1 %v1345_v55  ;;  %884 = vmatpush.msra.mxu0 %v707_v57 }
  0xd2   :  { %927 = vmatpush.msra.mxu1 %v1357_v62  ;;  %888 = vmatpush.msra.mxu0 %v713_v40 }
  0xd4   :  { %929 = vmatpush.msra.mxu1 %v1396_v7  ;;  %892 = vmatpush.msra.mxu0 %v719_v46 }
  0xd6   :  { %931 = vmatpush.msra.mxu1 %v1399_v8  ;;  %896 = vmatpush.msra.mxu0 %v725_v49 }
  0xd8   :  { %933 = vmatpush.msra.mxu1 %v1401_v3  ;;  %900 = vmatpush.msra.mxu0 %v731_v18 }
  0xda   :  { %935 = vmatpush.msra.mxu1 %v1406_v4  ;;  %904 = vmatpush.msra.mxu0 %v737_v63 }
  0xdc   :  { %937 = vmatpush.msra.mxu1 %v1418_v11  ;;  %908 = vmatpush.msra.mxu0 %v743_v43 }
  0xde   :  { %939 = vmatpush.msra.mxu1 %v1429_v30 }
  0xe0   :  { %941 = vmatpush.msra.mxu1 %v636_v27 }
  0xe2   :  { %943 = vmatpush.msra.mxu1 %v638_v12 }
  0xe4   :  { %945 = vmatpush.msra.mxu1 %v640_v34 }
 0x127   :  { %v458_v55 = vpop.f32.mrf.mxu0 }
 0x129   :  { %v497_v60 = vpop.f32.mrf.mxu1 }
 0x12b   :  { %v404_v26 = vpop.f32.mrf.mxu3 }
 0x133   :  { %v303_v29 = vpop.f32.mrf.mxu2  ;;  %v603_v5 = vpop.f32.mrf.mxu3 }
 0x134   :  { %v304_v39 = vadd.f32 %v965_v25, %v303_v29 }
 0x136   :  { %v405_v54 = vadd.f32 %v404_v26, %v304_v39 }
 0x138   :  { %v459_v59 = vadd.f32 %v458_v55, %v405_v54 }
 0x13a   :  { %v498_v61 = vadd.f32 %v497_v60, %v459_v59 }
 0x13b   :  { %v566_v62 = vpop.f32.mrf.mxu2 }
 0x13c   :  { %v567_v2 = vadd.f32 %v566_v62, %v498_v61 }
 0x13e   :  { %v604_v6 = vadd.f32 %v603_v5, %v567_v2 }
 0x140   :  { %v606_v13 = vmax.f32 %v604_v6, 0.0 }
 0x142   :  { %v642_v14 = vand.u32 4294901760, %v606_v13 }
 0x144   :  { %v643_v15 = vsub.f32 %v606_v13, %v642_v14  ;;  %748 = vmatmul.f32.vlgmr.msrb.gmra.mxu1 %v642_v14 }
 0x146   :  { %802 = vmatmul.f32.vlgmr.msrb.gmra.mxu2 %v643_v15  ;;  %v644_v19 = vand.u32 4294901760, %v643_v15 }
 0x148   :  { %841 = vmatmul.f32.vlgmr.msrb.gmra.mxu3 %v644_v19  ;;  %v645_v24 = vsub.f32 %v643_v15, %v644_v19 }
 0x14a   :  { %v646_v32 = vand.u32 4294901760, %v645_v24 }
 0x14c   :  { %647 = vmatmul.f32.vlgmr.msrb.gmra.mxu0 %v646_v32  ;;  %947 = vmatmul.f32.vlgmr.msra.gmra.mxu1 %v642_v14 }
 0x154   :  { %910 = vmatmul.f32.vlgmr.msra.gmra.mxu0 %v642_v14 }
 0x1c1   :  { %v749_v56 = vpop.f32.mrf.mxu1 }
 0x1c9   :  { %v648_v7 = vpop.f32.mrf.mxu0  ;;  %v803_v4 = vpop.f32.mrf.mxu2 }
 0x1ca   :  { %v649_v8 = vadd.f32 %v966_v45, %v648_v7  ;;  %v948_v21 = vpop.f32.mrf.mxu1 }
 0x1cb   :  { %v842_v38 = vpop.f32.mrf.mxu3 }
 0x1cc   :  { %v750_v3 = vadd.f32 %v749_v56, %v649_v8 }
 0x1ce   :  { %v804_v37 = vadd.f32 %v803_v4, %v750_v3 }
 0x1d0   :  { %v843_v10 = vadd.f32 %v842_v38, %v804_v37 }
 0x1d1   :  { %v911_v11 = vpop.f32.mrf.mxu0 }
 0x1d2   :  { %v912_v20 = vadd.f32 %v911_v11, %v843_v10 }
 0x1d4   :  { %v949_v22 = vadd.f32 %v948_v21, %v912_v20 }
 0x1d6   :  { %952 = vst.msk [vmem:[%s1536_s3] sm:$0xff] %vm951_vm1, %v949_v22 }
 0x1d7   :  { %957 = vsyncpa [#allocation3], 1 }
 0x1d8   :  { %958 = vsyncpa [#allocation5], 1 }

</bundles_post_ra>
